<compile_context>
chip_gen: v7x
topology: tpu7x:2x2x1
jax: 0.10.0
libtpu: 0.0.40
codegen_flags: <defaults>
</compile_context>

<pallas_src>
import functools

import jax
import jax.numpy as jnp
from jax import lax
from jax.experimental import pallas as pl
from jax.experimental.pallas import tpu as pltpu

LANE = 128
SUBLANE = 8


def _partial_sum_kernel(x_ref, o_ref, *, tm, rows_valid, mask_tail):
    # x_ref: (tm, 128) tile of the flattened input (native dtype)
    # o_ref: (1, 8, 128) f32 per-block partial sum
    x = x_ref[...].astype(jnp.float32)
    if mask_tail:
        # Only the ragged last block reads past the array; zero those rows.
        row_ids = pl.program_id(0) * tm + lax.broadcasted_iota(
            jnp.int32, (tm, LANE), 0
        )
        x = jnp.where(row_ids < rows_valid, x, 0.0)
    # Fold the tile to an (8, 128) partial: splitting the leading (sublane)
    # dim is layout-free, and the axis-0 sum is pure VPU elementwise adds.
    o_ref[0] = jnp.sum(x.reshape(tm // SUBLANE, SUBLANE, LANE), axis=0)


def matrix_reduce_sum(x, *, tm=512):
    """Sum of all elements of x (matches torch.sum(x) -> 0-d tensor)."""
    out_dtype = x.dtype if jnp.issubdtype(x.dtype, jnp.floating) else jnp.float32

    flat = x.reshape(-1)  # free (bitcast) for a contiguous input
    n = flat.shape[0]
    if n == 0:
        return jnp.zeros((), dtype=out_dtype)

    # Pad only when the input is not a multiple of one (8, 128) tile; the
    # aligned case (including the test shape) streams the original buffer.
    chunk = SUBLANE * LANE
    if n % chunk != 0:
        pad = chunk - n % chunk
        flat = jnp.concatenate([flat, jnp.zeros((pad,), dtype=flat.dtype)])
    rows = flat.shape[0] // LANE  # always a multiple of 8
    x2d = flat.reshape(rows, LANE)  # free

    tm_eff = min(tm, rows)  # both multiples of 8
    grid = pl.cdiv(rows, tm_eff)
    mask_tail = (rows % tm_eff) != 0

    kernel = functools.partial(
        _partial_sum_kernel, tm=tm_eff, rows_valid=rows, mask_tail=mask_tail
    )

    partials = pl.pallas_call(
        kernel,
        out_shape=jax.ShapeDtypeStruct((grid, SUBLANE, LANE), jnp.float32),
        grid_spec=pltpu.PrefetchScalarGridSpec(
            num_scalar_prefetch=0,
            grid=(grid,),
            in_specs=[pl.BlockSpec((tm_eff, LANE), lambda i: (i, 0))],
            out_specs=pl.BlockSpec((1, SUBLANE, LANE), lambda i: (i, 0, 0)),
        ),
        compiler_params=pltpu.CompilerParams(
            dimension_semantics=("parallel",)
        ),
    )(x2d)

    # Tiny final reduction over (grid, 8, 128) partials outside the kernel.
    return jnp.sum(partials).astype(out_dtype)


if __name__ == "__main__":
    key = jax.random.PRNGKey(0)

    # Primary test: the module's expected NCHW input (aligned -> no pad copy).
    x = jax.random.normal(key, (2, 4, 16, 16), dtype=jnp.float32)
    z = matrix_reduce_sum(x)
    jax.block_until_ready(z)
    ref = jnp.sum(x)
    assert z.shape == ref.shape == ()
    assert jnp.allclose(z, ref, rtol=1e-5, atol=1e-5), (z, ref)

    # Secondary test: ragged shape + small tile to exercise the pad path and
    # the in-kernel tail mask (rows=24, tm=16 -> 2 blocks, last one ragged).
    key2 = jax.random.PRNGKey(1)
    x2 = jax.random.normal(key2, (3, 1000), dtype=jnp.float32)
    z2 = matrix_reduce_sum(x2, tm=16)
    jax.block_until_ready(z2)
    ref2 = jnp.sum(x2)
    assert z2.shape == ref2.shape == ()
    assert jnp.allclose(z2, ref2, rtol=1e-5, atol=1e-5), (z2, ref2)

    print("KERNEL_OK")
</pallas_src>

<mosaic_0001>
module attributes {stable_mosaic.version = 11 : i64} {
  func.func @_partial_sum_kernel(%arg0: i32, %arg1: memref<16x128xf32, #tpu.memory_space<vmem>>, %arg2: memref<1x8x128xf32, #tpu.memory_space<vmem>>) attributes {dimension_semantics = [#tpu.dimension_semantics<parallel>], iteration_bounds = array<i64: 1>, scalar_prefetch = 0 : i64, scratch_operands = 0 : i64, tpu.core_type = #tpu.core_type<tc>, window_params = [{transform_indices = @transform_0, window_bounds = array<i64: 16, 128>}, {transform_indices = @transform_1, window_bounds = array<i64: 1, 8, 128>}]} {
    %c0 = arith.constant 0 : index
    %c0_0 = arith.constant 0 : index
    %0 = vector.load %arg1[%c0, %c0_0] : memref<16x128xf32, #tpu.memory_space<vmem>>, vector<16x128xf32>
    %1 = vector.shape_cast %0 : vector<16x128xf32> to vector<2x8x128xf32>
    %cst = arith.constant dense<0.000000e+00> : vector<8x128xf32>
    %2 = vector.multi_reduction <add>, %1, %cst [0] : vector<2x8x128xf32> to vector<8x128xf32>
    %c0_1 = arith.constant 0 : index
    %c0_2 = arith.constant 0 : index
    %c0_3 = arith.constant 0 : index
    %3 = vector.load %arg2[%c0_1, %c0_2, %c0_3] : memref<1x8x128xf32, #tpu.memory_space<vmem>>, vector<1x8x128xf32>
    %4 = vector.shape_cast %3 : vector<1x8x128xf32> to vector<8x128xf32>
    %5 = vector.shape_cast %2 : vector<8x128xf32> to vector<1x8x128xf32>
    tpu.vector_store %arg2[%c0_1, %c0_2, %c0_3], %5 {strides = array<i32>} : memref<1x8x128xf32, #tpu.memory_space<vmem>>, vector<1x8x128xf32>,
    return
  }
  func.func @transform_0(%arg0: i32) -> (i32, i32) {
    %c0_i32 = arith.constant 0 : i32
    %c0_i32_0 = arith.constant 0 : i32
    return %arg0, %c0_i32 : i32, i32
  }
  func.func @transform_1(%arg0: i32) -> (i32, i32, i32) {
    %c0_i32 = arith.constant 0 : i32
    %c0_i32_0 = arith.constant 0 : i32
    %c0_i32_1 = arith.constant 0 : i32
    return %arg0, %c0_i32, %c0_i32_0 : i32, i32, i32
  }
}

</mosaic_0001>

<bundles_post_ra>
// kernel: tpu_custom_call.1
= control target key start
LH: loop header
LB: loop body
LE: loop exit
PB: predicated region body
PF: predicated region fallthrough
CT: control target
= control target key end

     0   :  { %6 = vsyncpa [#allocation3], 0  ;;  %s132_s0 = inlined_call_operand.hbm [shape: f32[16,128], index: 0, kind: input, shape index: {}]   ;;  %s133_s1 = inlined_call_operand.hbm [shape: f32[1,8,128], index: 1, kind: output, shape index: {}]  }
   0x1   :  { %7 = vsyncpa [#allocation4], 0  ;;  %s94_s6 = smov [#allocation2]   ;;  %s46_s10 = scalar_lea.hbm %s132_s0, 256 }
   0x2   :  { %s13_s7 = sshll.u32 %s94_s6, 4  ;;  %p47_p0 = scmp.ne.s32.totalorder %s132_s0, %s46_s10  ;;  %s14_s7 = int_to_ptr.vmem [resolvable:$true] %s13_s7 }
   0x3   :  { %p50_p1 = scmp.lt.u32.totalorder %s46_s10, %s132_s0 }
   0x5   :  { %p52_p2 = pnand %p50_p1, %p47_p0 }
   0x7   :  { %55 = shalt.err (!%p52_p2)
}
   0x8   :  { %s56_s15 = scalar_lea.vmem %s14_s7, 256  ;;  %p61_p4 = scmp.lt.s32.totalorder %s14_s7, %s14_s7 }
   0x9   :  { %p57_p3 = scmp.ne.s32.totalorder %s14_s7, %s56_s15  ;;  %p62_p5 = scmp.lt.s32.totalorder %s56_s15, %s56_s15 }
   0xb   :  { %p63_p6 = por %p62_p5, %p61_p4 }
   0xd   :  { %p64_p7 = pnand %p63_p6, %p57_p3 }
   0xf   :  { %67 = shalt.err (!%p64_p7)
}
  0x10   :  { %s95_s16 = smov 128   ;;  %s96_s17 = smov 8  }
  0x11   :  { %19 = dma.hbm_to_vmem [thread:$0]  %s132_s0, 256, %s14_s7, [#allocation3], %s95_s16, %s95_s16, %s96_s17  }
  0x12   :  { %90 = dma.done.wait [#allocation3], 256  }
  0x13   :  { %91 = vsyncadd [#allocation3], 4294967040  ;;  %s97_s20 = smov [#allocation5]   ;;  %v23_v0 = vld [vmem:[#allocation2] sm:$0xff]  ;;  %v24_v1 = vld [vmem:[#allocation2 + $0x8] sm:$0xff] }
  0x14   :  { %s33_s21 = sshll.u32 %s97_s20, 4  ;;  %v25_v2 = vadd.f32 %v24_v1, %v23_v0  ;;  %s34_s21 = int_to_ptr.vmem [resolvable:$true] %s33_s21 }
  0x15   :  { %s68_s22 = scalar_lea.vmem %s34_s21, 128  ;;  %p73_p9 = scmp.lt.s32.totalorder %s34_s21, %s34_s21 }
  0x16   :  { %26 = vst [vmem:[#allocation5] sm:$0xff] %v25_v2  ;;  %p69_p8 = scmp.ne.s32.totalorder %s34_s21, %s68_s22  ;;  %p74_p10 = scmp.lt.s32.totalorder %s68_s22, %s68_s22 }
  0x18   :  { %p75_p11 = por %p74_p10, %p73_p9 }
  0x1a   :  { %p76_p12 = pnand %p75_p11, %p69_p8 }
  0x1c   :  { %79 = shalt.err (!%p76_p12)
}
  0x1d   :  { %s80_s0 = scalar_lea.hbm %s133_s1, 128 }
  0x1e   :  { %p81_p13 = scmp.ne.s32.totalorder %s133_s1, %s80_s0  ;;  %p84_p0 = scmp.lt.u32.totalorder %s80_s0, %s133_s1 }
  0x20   :  { %p86_p1 = pnand %p84_p0, %p81_p13 }
  0x22   :  { %89 = shalt.err (!%p86_p1)
}
  0x23   :  { %36 = dma.vmem_to_hbm [thread:$0]  %s34_s21, 128, %s133_s1, [#allocation4]  }
  0x24   :  { %92 = dma.done.wait [#allocation4], 128  }
  0x25   :  { %93 = vsyncadd [#allocation4], 4294967168 }
  0x26   :  { %40 = vsyncpa [#allocation3], 1 }
  0x27   :  { %41 = vsyncpa [#allocation4], 1 }

</bundles_post_ra>
